<compile_context>
chip_gen: v6e
topology: v6e:2x2x1
jax: 0.10.0
libtpu: 0.0.40
codegen_flags: <defaults>
</compile_context>

<pallas_src>
import jax
import jax.numpy as jnp
from jax.experimental import pallas as pl
from jax.experimental.pallas import tpu as pltpu


# --------------------------------------------------------------------------
# Kernel body
# --------------------------------------------------------------------------
def _squared_relu_kernel(x_ref, o_ref):
    x = x_ref[...]
    # Narrow floats (bf16/fp16/fp8) are squared at f32 precision and cast back on
    # the store: bit-identical for a single multiply, and avoids relying on narrow
    # VALU support (v5e has no bf16 VALU). Integers keep the input dtype so the
    # wraparound semantics match `F.relu(x) ** 2` on an integer torch tensor.
    if jnp.issubdtype(x.dtype, jnp.floating) and jnp.dtype(x.dtype).itemsize < 4:
        x = x.astype(jnp.float32)
    r = jnp.maximum(x, 0)
    o_ref[...] = (r * r).astype(o_ref.dtype)


def _jnp_squared_relu(x):
    """Reference-identical elementwise path for the tiny ragged tail."""
    if jnp.issubdtype(x.dtype, jnp.floating) and jnp.dtype(x.dtype).itemsize < 4:
        r = jnp.maximum(x.astype(jnp.float32), 0.0)
        return (r * r).astype(x.dtype)
    r = jnp.maximum(x, 0)
    return (r * r).astype(x.dtype)


# --------------------------------------------------------------------------
# Generation-aware plumbing
# --------------------------------------------------------------------------
_DEFAULT_BLOCK_BYTES = {
    "v5": 2 * 1024 * 1024,   # 16 MiB scoped-VMEM default: 2 in + 2 out bufs = 8 MiB
    "v6": 4 * 1024 * 1024,   # 32 MiB scoped default
    "v7": 4 * 1024 * 1024,   # 32 MiB scoped default, 64 MiB physical per TC
}

# Lane widths to try (all multiples of 128); wide, lane-dense slabs preferred.
_LANE_CANDIDATES = (1024, 2048, 512, 4096, 8192, 256, 128)


def _tpu_generation():
    try:
        kind = jax.devices()[0].device_kind.lower()
    except Exception:
        return None
    for gen in ("v7", "v6", "v5"):
        if gen in kind:
            return gen
    return None


def _semantics_candidates(generation):
    if generation == "v7":
        # v7x has 2 TensorCores per chip; only CORE_PARALLEL actually shards the
        # grid across them for this HBM-bound op. Fall back to "parallel" if the
        # toolchain rejects it for this grid.
        return ((pltpu.CORE_PARALLEL,), ("parallel",))
    return (("parallel",),)


def _choose_width(total):
    for w in _LANE_CANDIDATES:
        if total % w == 0:
            return w
    return None


# --------------------------------------------------------------------------
# pallas_call wrapper
# --------------------------------------------------------------------------
def _call_kernel(x2d, block_rows, semantics, vmem_limit_bytes, donate):
    rows, w = x2d.shape
    itemsize = jnp.dtype(x2d.dtype).itemsize
    total = rows * w
    cost = pl.CostEstimate(
        flops=2 * total,                      # one max + one mul per element
        transcendentals=0,
        bytes_accessed=2 * total * itemsize,  # 1 HBM read + 1 HBM write
    )
    extra = {"input_output_aliases": {0: 0}} if donate else {}
    return pl.pallas_call(
        _squared_relu_kernel,
        out_shape=jax.ShapeDtypeStruct((rows, w), x2d.dtype),
        grid=(pl.cdiv(rows, block_rows),),
        in_specs=[pl.BlockSpec((block_rows, w), lambda i: (i, 0))],
        out_specs=pl.BlockSpec((block_rows, w), lambda i: (i, 0)),
        compiler_params=pltpu.CompilerParams(
            dimension_semantics=semantics,
            vmem_limit_bytes=vmem_limit_bytes,
        ),
        cost_estimate=cost,
        **extra,
    )(x2d)


def _squared_relu_2d(x2d, target_block_bytes, generation, donate):
    rows, w = x2d.shape
    itemsize = jnp.dtype(x2d.dtype).itemsize
    # Sublane packing per dtype width: f32 -> 8, bf16 -> 16, int8/fp8 -> 32.
    sublane = {4: 8, 2: 16, 1: 32}.get(itemsize, 8)

    bytes_per_row = w * itemsize
    block_rows = max(1, target_block_bytes // bytes_per_row)
    block_rows = max(sublane, (block_rows // sublane) * sublane)
    if block_rows >= rows:
        block_rows = rows  # full-extent block is always a legal block shape

    block_bytes = block_rows * w * itemsize
    # Pipeline double-buffers input and output (4 x block); add headroom but never
    # push past ~48 MiB (v7x physical VMEM is only 64 MiB per TC).
    vmem_limit_bytes = int(
        min(48 * 1024 * 1024,
            max(16 * 1024 * 1024, 4 * block_bytes + 4 * 1024 * 1024))
    )

    last_err = None
    for semantics in _semantics_candidates(generation):
        try:
            return _call_kernel(x2d, block_rows, semantics, vmem_limit_bytes, donate)
        except Exception as err:  # fall back (e.g. CORE_PARALLEL unsupported)
            last_err = err
    raise last_err


# --------------------------------------------------------------------------
# Public entry point
# --------------------------------------------------------------------------
def squared_relu(x: jax.Array, *, target_block_bytes: int | None = None,
                 donate: bool = False) -> jax.Array:
    """Elementwise relu(x)**2 via a Pallas TPU kernel. Works for any shape/dtype."""
    orig_shape = x.shape
    total = x.size
    if total == 0:
        return x

    generation = _tpu_generation()
    if target_block_bytes is None:
        target_block_bytes = _DEFAULT_BLOCK_BYTES.get(generation, 2 * 1024 * 1024)

    x_flat = x.reshape(-1)  # row-major flatten: layout no-op
    w = _choose_width(total)

    if w is not None:
        out2d = _squared_relu_2d(x_flat.reshape(total // w, w),
                                 target_block_bytes, generation, donate)
        return out2d.reshape(orig_shape)

    # Ragged fallback (total % 128 != 0): no jnp.pad of the whole input. The
    # lane-aligned bulk runs through the kernel; the <128-element tail is done
    # in plain jnp. One concatenate copy remains.
    # TODO(synk): fold the tail into the kernel with a masked last-block store
    # (scalar-prefetch valid length + pltpu.store(mask=...)) to drop that copy.
    w = 128
    n_bulk = (total // w) * w
    if n_bulk == 0:
        return _jnp_squared_relu(x_flat).reshape(orig_shape)
    bulk = _squared_relu_2d(x_flat[:n_bulk].reshape(n_bulk // w, w),
                            target_block_bytes, generation, donate=False)
    tail = _jnp_squared_relu(x_flat[n_bulk:])
    return jnp.concatenate([bulk.reshape(-1), tail]).reshape(orig_shape)


if __name__ == "__main__":
    key = jax.random.PRNGKey(0)
    k1, k2, k3 = jax.random.split(key, 3)

    # NCHW activation, same convention as the PyTorch module would receive.
    x = jax.random.normal(k1, (2, 4, 16, 16), dtype=jnp.float32)
    y = jax.block_until_ready(squared_relu(x))
    y_ref = jnp.maximum(x, 0.0) ** 2
    assert y.shape == x.shape and y.dtype == x.dtype
    assert jnp.allclose(y, y_ref, atol=1e-6, rtol=1e-6)

    # bf16 path (sublane=16 alignment, f32 intermediate compute).
    xb = jax.random.normal(k2, (2, 8, 32), dtype=jnp.bfloat16)
    yb = jax.block_until_ready(squared_relu(xb))
    yb_ref = (jnp.maximum(xb.astype(jnp.float32), 0.0) ** 2).astype(jnp.bfloat16)
    assert yb.shape == xb.shape and yb.dtype == jnp.bfloat16
    assert jnp.allclose(yb.astype(jnp.float32), yb_ref.astype(jnp.float32),
                        atol=1e-2, rtol=1e-2)

    # Ragged sizes: (5, 131) exercises bulk-kernel + jnp tail; (3, 5, 7) is all tail.
    xr = jax.random.normal(k3, (5, 131), dtype=jnp.float32)
    yr = jax.block_until_ready(squared_relu(xr))
    assert jnp.allclose(yr, jnp.maximum(xr, 0.0) ** 2, atol=1e-6, rtol=1e-6)

    xs = jax.random.normal(jax.random.PRNGKey(1), (3, 5, 7), dtype=jnp.float32)
    ys = jax.block_until_ready(squared_relu(xs))
    assert jnp.allclose(ys, jnp.maximum(xs, 0.0) ** 2, atol=1e-6, rtol=1e-6)

    print("KERNEL_OK")
</pallas_src>

<mosaic_0001>
module attributes {stable_mosaic.version = 11 : i64} {
  func.func @_squared_relu_kernel(%arg0: i32, %arg1: memref<2x1024xf32, #tpu.memory_space<vmem>>, %arg2: memref<2x1024xf32, #tpu.memory_space<vmem>>) attributes {dimension_semantics = [#tpu.dimension_semantics<parallel>], iteration_bounds = array<i64: 1>, scalar_prefetch = 0 : i64, scratch_operands = 0 : i64, tpu.core_type = #tpu.core_type<tc>, window_params = [{transform_indices = @transform_0, window_bounds = array<i64: 2, 1024>}, {transform_indices = @transform_1, window_bounds = array<i64: 2, 1024>}]} {
    %c0 = arith.constant 0 : index
    %c0_0 = arith.constant 0 : index
    %0 = vector.load %arg1[%c0, %c0_0] : memref<2x1024xf32, #tpu.memory_space<vmem>>, vector<2x1024xf32>
    %cst = arith.constant 0.000000e+00 : f32
    %1 = vector.broadcast %cst : f32 to vector<2x1024xf32>
    %2 = arith.maximumf %0, %1 : vector<2x1024xf32>
    %3 = arith.mulf %2, %2 : vector<2x1024xf32>
    %c0_1 = arith.constant 0 : index
    %c0_2 = arith.constant 0 : index
    %4 = vector.load %arg2[%c0_1, %c0_2] : memref<2x1024xf32, #tpu.memory_space<vmem>>, vector<2x1024xf32>
    tpu.vector_store %arg2[%c0_1, %c0_2], %3 {strides = array<i32>} : memref<2x1024xf32, #tpu.memory_space<vmem>>, vector<2x1024xf32>,
    return
  }
  func.func @transform_0(%arg0: i32) -> (i32, i32) {
    %c0_i32 = arith.constant 0 : i32
    %c0_i32_0 = arith.constant 0 : i32
    return %arg0, %c0_i32 : i32, i32
  }
  func.func @transform_1(%arg0: i32) -> (i32, i32) {
    %c0_i32 = arith.constant 0 : i32
    %c0_i32_0 = arith.constant 0 : i32
    return %arg0, %c0_i32 : i32, i32
  }
}

</mosaic_0001>

<bundles_post_ra>
// kernel: tpu_custom_call.1
= control target key start
LH: loop header
LB: loop body
LE: loop exit
PB: predicated region body
PF: predicated region fallthrough
CT: control target
= control target key end

     0   :  { %6 = vsyncpa [#allocation3], 0  ;;  %s108_s0 = inlined_call_operand.hbm [shape: f32[2,1024], index: 0, kind: input, shape index: {}]   ;;  %s109_s1 = inlined_call_operand.hbm [shape: f32[2,1024], index: 1, kind: output, shape index: {}]  }
   0x1   :  { %7 = vsyncpa [#allocation4], 0  ;;  %s90_s6 = smov [#allocation2]  }
   0x2   :  { %s14_s7 = sshll.u32 %s90_s6, 4  ;;  %s15_s7 = int_to_ptr.vmem [resolvable:$true] %s14_s7 }
   0x3   :  { %s54_s8 = scalar_lea.vmem %s15_s7, 256  ;;  %p59_p1 = scmp.lt.s32.totalorder %s15_s7, %s15_s7 }
   0x4   :  { %p55_p0 = scmp.ne.s32.totalorder %s15_s7, %s54_s8  ;;  %p60_p2 = scmp.lt.s32.totalorder %s54_s8, %s54_s8 }
   0x6   :  { %p61_p3 = por %p60_p2, %p59_p1 }
   0x8   :  { %p62_p4 = pnand %p61_p3, %p55_p0 }
   0xa   :  { %65 = shalt.err (!%p62_p4)
}
   0xb   :  { %17 = dma.hbm_to_vmem [thread:$0]  %s108_s0, 256, %s15_s7, [#allocation3]  }
   0xc   :  { %86 = dma.done.wait [#allocation3], 256  }
   0xd   :  { %87 = vsyncadd [#allocation3], 4294967040  ;;  %v21_v0 = vld [vmem:[#allocation2] sm:$0xff]  ;;  %v22_v1 = vld [vmem:[#allocation2 + $0x8] sm:$0xff]  ;;  %s91_s11 = smov [#allocation5]  }
   0xe   :  { %s35_s12 = sshll.u32 %s91_s11, 4  ;;  %v23_v2 = vmax.f32 %v21_v0, 0.0  ;;  %v24_v3 = vmax.f32 %v22_v1, 0.0  ;;  %s36_s12 = int_to_ptr.vmem [resolvable:$true] %s35_s12 }
   0xf   :  { %s66_s13 = scalar_lea.vmem %s36_s12, 256  ;;  %p71_p6 = scmp.lt.s32.totalorder %s36_s12, %s36_s12 }
  0x10   :  { %v25_v4 = vmul.f32 %v23_v2, %v23_v2  ;;  %v26_v5 = vmul.f32 %v24_v3, %v24_v3  ;;  %p67_p5 = scmp.ne.s32.totalorder %s36_s12, %s66_s13  ;;  %p72_p7 = scmp.lt.s32.totalorder %s66_s13, %s66_s13 }
  0x12   :  { %27 = vst [vmem:[#allocation5] sm:$0xff] %v25_v4  ;;  %28 = vst [vmem:[#allocation5 + $0x8] sm:$0xff] %v26_v5  ;;  %p73_p8 = por %p72_p7, %p71_p6 }
  0x14   :  { %p74_p9 = pnand %p73_p8, %p67_p5 }
  0x16   :  { %77 = shalt.err (!%p74_p9)
}
  0x17   :  { %38 = dma.vmem_to_hbm [thread:$0]  %s36_s12, 256, %s109_s1, [#allocation4]  }
  0x18   :  { %88 = dma.done.wait [#allocation4], 256  }
  0x19   :  { %89 = vsyncadd [#allocation4], 4294967040 }
  0x1a   :  { %42 = vsyncpa [#allocation3], 1 }
  0x1b   :  { %43 = vsyncpa [#allocation4], 1 }

</bundles_post_ra>
